<compile_context>
chip_gen: v5e
topology: v5e:2x2
jax: 0.10.0
libtpu: 0.0.40
codegen_flags: <defaults>
</compile_context>

<pallas_src>
import jax
import jax.numpy as jnp
from jax.experimental import pallas as pl
from jax.experimental.pallas import tpu as pltpu


# Older/newer jax name compatibility for the Mosaic compiler params.
_CompilerParams = getattr(pltpu, "CompilerParams", None)
if _CompilerParams is None:  # pragma: no cover
    _CompilerParams = getattr(pltpu, "TPUCompilerParams")


def _round_up(n, m):
    return ((n + m - 1) // m) * m


def _choose_tm(mp):
    """Mode-tile width in lanes: a multiple of 128 dividing mp, as large as is
    reasonable; prefer >= 2 tiles so the 'parallel' grid axis can be split
    across TensorCores on v7x."""
    cap = 2048
    best = 128
    t = 256
    while t <= min(mp, cap):
        if mp % t == 0:
            best = t
        t += 128
    if best == mp and mp >= 256 and (mp // 2) % 128 == 0:
        best = mp // 2
    return best


def _choose_ti(ic):
    """In-channel tile: full unroll for typical FNO widths, otherwise a small
    divisor so the reduction runs on a trailing 'arbitrary' grid axis."""
    if ic <= 16:
        return ic
    for t in (8, 4, 2):
        if ic % t == 0:
            return t
    return ic


def _pack_ri(re, im, tm):
    """(R, Mp) real + (R, Mp) imag -> (R, 2*Mp), interleaved per tm-wide mode
    tile: lanes [t*2tm, t*2tm+tm) = Re of tile t, next tm lanes = Im of tile t.
    One packed array halves the per-grid-step DMA count."""
    r, mp = re.shape
    nt = mp // tm
    re_t = re.reshape(r, nt, 1, tm)
    im_t = im.reshape(r, nt, 1, tm)
    return jnp.concatenate([re_t, im_t], axis=2).reshape(r, 2 * mp)


def _make_spectral_kernel(ti, bsz, oc, tm, has_i_axis, n_parts=2):
    """Kernel for an in-channel tile of (static) size ti."""
    np_eff = max(1, min(n_parts, ti))

    def kernel(x_ref, w_ref, o_ref):
        # x_ref: (ti*bsz, 2*tm)  rows i*bsz + b ; lanes [0:tm]=Re, [tm:2tm]=Im
        # w_ref: (ti*oc,  2*tm)  rows i*oc  + o ; same lane packing
        # o_ref: (bsz, oc, 2*tm) same lane packing; VMEM-resident across the
        #                        trailing reduction axis (if any).
        acc_r = [jnp.zeros((bsz, oc, tm), jnp.float32) for _ in range(np_eff)]
        acc_i = [jnp.zeros((bsz, oc, tm), jnp.float32) for _ in range(np_eff)]

        # Static unroll over the in-channel tile; independent partial
        # accumulators shorten the carried add chain.  4-mult complex MAC is
        # kept on purpose (kernel is DMA/overhead-bound at FNO sizes).
        for i in range(ti):
            p = i % np_eff
            xr = x_ref[i * bsz:(i + 1) * bsz, 0:tm][:, None, :]        # (B,1,tm)
            xi = x_ref[i * bsz:(i + 1) * bsz, tm:2 * tm][:, None, :]
            wr = w_ref[i * oc:(i + 1) * oc, 0:tm][None, :, :]          # (1,O,tm)
            wi = w_ref[i * oc:(i + 1) * oc, tm:2 * tm][None, :, :]
            acc_r[p] = acc_r[p] + (xr * wr - xi * wi)   # real part of complex MAC
            acc_i[p] = acc_i[p] + (xr * wi + xi * wr)   # imag part

        res_r = acc_r[0]
        res_i = acc_i[0]
        for p in range(1, np_eff):
            res_r = res_r + acc_r[p]
            res_i = res_i + acc_i[p]

        if has_i_axis:
            # Accumulate directly into the output block (same block index
            # across the trailing 'arbitrary' axis -> no scratch needed).
            @pl.when(pl.program_id(1) == 0)
            def _init():
                o_ref[...] = jnp.zeros_like(o_ref)

            o_ref[:, :, 0:tm] += res_r
            o_ref[:, :, tm:2 * tm] += res_i
        else:
            o_ref[:, :, 0:tm] = res_r
            o_ref[:, :, tm:2 * tm] = res_i

    return kernel


def _spectral_mix(x_pk, w_pk, bsz, ic, oc, mp, tm):
    """out[b,o,m] = sum_i x[b,i,m] * w[i,o,m]  (complex), on packed planes.

    x_pk: (ic*bsz, 2*mp) f32, w_pk: (ic*oc, 2*mp) f32 -> (bsz, oc, 2*mp) f32.
    """
    assert mp % tm == 0 and tm % 128 == 0
    nt = mp // tm
    ti = _choose_ti(ic)
    ni = ic // ti
    has_i = ni > 1

    if has_i:
        grid = (nt, ni)
        x_spec = pl.BlockSpec((ti * bsz, 2 * tm), lambda m, i: (i, m))
        w_spec = pl.BlockSpec((ti * oc, 2 * tm), lambda m, i: (i, m))
        o_spec = pl.BlockSpec((bsz, oc, 2 * tm), lambda m, i: (0, 0, m))
        dims = ("parallel", "arbitrary")
    else:
        grid = (nt,)
        x_spec = pl.BlockSpec((ic * bsz, 2 * tm), lambda m: (0, m))
        w_spec = pl.BlockSpec((ic * oc, 2 * tm), lambda m: (0, m))
        o_spec = pl.BlockSpec((bsz, oc, 2 * tm), lambda m: (0, 0, m))
        dims = ("parallel",)

    # VMEM limit from the actual (double-buffered) tile footprint, capped well
    # below v7x's 64 MiB/TC physical VMEM.
    tile_bytes = 4 * (2 * tm) * (ti * bsz + ti * oc + bsz * oc)
    vmem_limit = int(min(32 * 1024 * 1024, max(4 * 1024 * 1024, 6 * tile_bytes)))

    call_kwargs = {}
    if hasattr(pl, "CostEstimate"):
        call_kwargs["cost_estimate"] = pl.CostEstimate(
            flops=8 * bsz * ic * oc * mp,
            transcendentals=0,
            bytes_accessed=4 * 2 * mp * (ic * bsz + ic * oc + bsz * oc),
        )

    return pl.pallas_call(
        _make_spectral_kernel(ti, bsz, oc, tm, has_i),
        out_shape=jax.ShapeDtypeStruct((bsz, oc, 2 * mp), jnp.float32),
        grid=grid,
        in_specs=[x_spec, w_spec],
        out_specs=o_spec,
        compiler_params=_CompilerParams(
            dimension_semantics=dims,
            vmem_limit_bytes=vmem_limit,
        ),
        **call_kwargs,
    )(x_pk, w_pk)


class SpectralConv2dPallas:
    """JAX/Pallas re-implementation of the PyTorch SpectralConv2d module."""

    def __init__(self, in_channels, out_channels, modes1, modes2, key):
        self.in_channels = in_channels
        self.out_channels = out_channels
        self.modes1 = modes1
        self.modes2 = modes2
        scale = 1.0 / (in_channels * out_channels)
        shape = (in_channels, out_channels, modes1, modes2)
        k1, k2, k3, k4 = jax.random.split(key, 4)
        # torch.rand(..., dtype=torch.cfloat): U[0,1) real + i * U[0,1) imag.
        self.weights1 = (scale * (jax.random.uniform(k1, shape, jnp.float32)
                                  + 1j * jax.random.uniform(k2, shape, jnp.float32))
                         ).astype(jnp.complex64)
        self.weights2 = (scale * (jax.random.uniform(k3, shape, jnp.float32)
                                  + 1j * jax.random.uniform(k4, shape, jnp.float32))
                         ).astype(jnp.complex64)

        # Hoisted weight preprocessing (done once, not per forward pass):
        # concat the two mode blocks, flatten (I,O) onto a dense sublane axis,
        # split real/imag, pad the mode axis to a multiple of 128, and pack
        # Re/Im per mode-tile onto the lane axis.
        M = 2 * modes1 * modes2
        Mp = _round_up(M, 128)
        tm = _choose_tm(Mp)
        w = jnp.concatenate([self.weights1, self.weights2], axis=2)   # (I,O,2m1,m2)
        w = w.reshape(in_channels * out_channels, M)                  # rows i*O + o
        pad = ((0, 0), (0, Mp - M))
        wr = jnp.pad(jnp.real(w).astype(jnp.float32), pad)
        wi = jnp.pad(jnp.imag(w).astype(jnp.float32), pad)
        # TODO(synk): optionally store bf16 weight planes (upcast in-kernel) in
        # memory-bound regimes; kept f32 here for exact parity with the reference.
        self.w_pk = _pack_ri(wr, wi, tm)                              # (I*O, 2*Mp)
        self._M = M
        self._Mp = Mp
        self._tm = tm

    def __call__(self, x):
        # x: (B, Cin, H, W) float32, NCHW like PyTorch
        B, Ci, H, W = x.shape
        m1, m2 = self.modes1, self.modes2
        Co = self.out_channels
        M, Mp, tm = self._M, self._Mp, self._tm
        Wf = W // 2 + 1
        assert Ci == self.in_channels
        assert H >= 2 * m1 and Wf >= m2, "spatial size too small for retained modes"

        x_ft = jnp.fft.rfft2(x)                                       # (B, Ci, H, Wf) c64

        # Gather the retained low / high frequency mode blocks.
        x_modes = jnp.concatenate(
            [x_ft[:, :, :m1, :m2], x_ft[:, :, H - m1:, :m2]], axis=2)  # (B,Ci,2m1,m2)

        # Channel-major (rows i*B + b), modes flattened onto the lane axis,
        # zero-padded to Mp, Re/Im packed per mode-tile.
        xm = jnp.transpose(x_modes, (1, 0, 2, 3)).reshape(Ci * B, M)
        pad = ((0, 0), (0, Mp - M))
        xr = jnp.pad(jnp.real(xm).astype(jnp.float32), pad)
        xi = jnp.pad(jnp.imag(xm).astype(jnp.float32), pad)
        x_pk = _pack_ri(xr, xi, tm)                                    # (Ci*B, 2*Mp)

        out_pk = _spectral_mix(x_pk, self.w_pk, B, Ci, Co, Mp, tm)     # (B, Co, 2*Mp)

        # Unpack Re/Im, drop the lane padding, rebuild complex modes.
        nt = Mp // tm
        op = out_pk.reshape(B, Co, nt, 2, tm)
        or_ = op[:, :, :, 0, :].reshape(B, Co, Mp)[:, :, :M]
        oi_ = op[:, :, :, 1, :].reshape(B, Co, Mp)[:, :, :M]
        out_c = (or_ + 1j * oi_).astype(jnp.complex64).reshape(B, Co, 2 * m1, m2)

        # Scatter modes back into the full spectrum (single concat + pad).
        out_cols = jnp.concatenate(
            [out_c[:, :, :m1, :],
             jnp.zeros((B, Co, H - 2 * m1, m2), jnp.complex64),
             out_c[:, :, m1:, :]], axis=2)                             # (B, Co, H, m2)
        out_ft = jnp.pad(out_cols, ((0, 0), (0, 0), (0, 0), (0, Wf - m2)))

        return jnp.fft.irfft2(out_ft, s=(H, W))                        # (B, Co, H, W)


def _reference_forward(x, weights1, weights2, modes1, modes2, out_channels):
    """Pure-JAX reference (mirrors the PyTorch forward) for validation."""
    B, Ci, H, W = x.shape
    x_ft = jnp.fft.rfft2(x)
    out_ft = jnp.zeros((B, out_channels, H, W // 2 + 1), jnp.complex64)
    out_ft = out_ft.at[:, :, :modes1, :modes2].set(
        jnp.einsum('bixy,ioxy->boxy', x_ft[:, :, :modes1, :modes2], weights1))
    out_ft = out_ft.at[:, :, H - modes1:, :modes2].set(
        jnp.einsum('bixy,ioxy->boxy', x_ft[:, :, H - modes1:, :modes2], weights2))
    return jnp.fft.irfft2(out_ft, s=(H, W))


if __name__ == "__main__":
    key = jax.random.PRNGKey(0)
    k_x, k_w = jax.random.split(key)

    B, Cin, Cout, H, W = 2, 4, 4, 16, 16
    modes1, modes2 = 4, 4

    x = jax.random.normal(k_x, (B, Cin, H, W), dtype=jnp.float32)

    layer = SpectralConv2dPallas(Cin, Cout, modes1, modes2, k_w)

    fwd = jax.jit(lambda v: layer(v))
    out = jax.block_until_ready(fwd(x))

    ref = jax.block_until_ready(
        _reference_forward(x, layer.weights1, layer.weights2, modes1, modes2, Cout))

    assert out.shape == (B, Cout, H, W), out.shape
    assert jnp.allclose(out, ref, atol=1e-4, rtol=1e-4), \
        float(jnp.max(jnp.abs(out - ref)))

    print("KERNEL_OK")
</pallas_src>

<mosaic_0001>
module attributes {stable_mosaic.version = 11 : i64} {
  func.func @kernel(%arg0: i32, %arg1: memref<8x256xf32, #tpu.memory_space<vmem>>, %arg2: memref<16x256xf32, #tpu.memory_space<vmem>>, %arg3: memref<2x4x256xf32, #tpu.memory_space<vmem>>) attributes {dimension_semantics = [#tpu.dimension_semantics<parallel>], iteration_bounds = array<i64: 1>, scalar_prefetch = 0 : i64, scratch_operands = 0 : i64, tpu.core_type = #tpu.core_type<tc>, window_params = [{transform_indices = @transform_0, window_bounds = array<i64: 8, 256>}, {transform_indices = @transform_1, window_bounds = array<i64: 16, 256>}, {transform_indices = @transform_2, window_bounds = array<i64: 2, 4, 256>}]} {
    %cst = arith.constant 0.000000e+00 : f32
    %0 = vector.broadcast %cst : f32 to vector<2x4x128xf32>
    %cst_0 = arith.constant 0.000000e+00 : f32
    %1 = vector.broadcast %cst_0 : f32 to vector<2x4x128xf32>
    %cst_1 = arith.constant 0.000000e+00 : f32
    %2 = vector.broadcast %cst_1 : f32 to vector<2x4x128xf32>
    %cst_2 = arith.constant 0.000000e+00 : f32
    %3 = vector.broadcast %cst_2 : f32 to vector<2x4x128xf32>
    %c0 = arith.constant 0 : index
    %c0_3 = arith.constant 0 : index
    %4 = vector.load %arg1[%c0, %c0_3] : memref<8x256xf32, #tpu.memory_space<vmem>>, vector<2x128xf32>
    %5 = vector.shape_cast %4 : vector<2x128xf32> to vector<2x1x128xf32>
    %c0_4 = arith.constant 0 : index
    %c128 = arith.constant 128 : index
    %6 = vector.load %arg1[%c0_4, %c128] : memref<8x256xf32, #tpu.memory_space<vmem>>, vector<2x128xf32>
    %7 = vector.shape_cast %6 : vector<2x128xf32> to vector<2x1x128xf32>
    %c0_5 = arith.constant 0 : index
    %c0_6 = arith.constant 0 : index
    %8 = vector.load %arg2[%c0_5, %c0_6] : memref<16x256xf32, #tpu.memory_space<vmem>>, vector<4x128xf32>
    %9 = vector.shape_cast %8 : vector<4x128xf32> to vector<1x4x128xf32>
    %c0_7 = arith.constant 0 : index
    %c128_8 = arith.constant 128 : index
    %10 = vector.load %arg2[%c0_7, %c128_8] : memref<16x256xf32, #tpu.memory_space<vmem>>, vector<4x128xf32>
    %11 = vector.shape_cast %10 : vector<4x128xf32> to vector<1x4x128xf32>
    %12 = vector.broadcast %5 : vector<2x1x128xf32> to vector<2x4x128xf32>
    %13 = vector.broadcast %9 : vector<1x4x128xf32> to vector<2x4x128xf32>
    %14 = arith.mulf %12, %13 : vector<2x4x128xf32>
    %15 = vector.broadcast %7 : vector<2x1x128xf32> to vector<2x4x128xf32>
    %16 = vector.broadcast %11 : vector<1x4x128xf32> to vector<2x4x128xf32>
    %17 = arith.mulf %15, %16 : vector<2x4x128xf32>
    %18 = arith.subf %14, %17 : vector<2x4x128xf32>
    %19 = arith.addf %0, %18 : vector<2x4x128xf32>
    %20 = vector.broadcast %5 : vector<2x1x128xf32> to vector<2x4x128xf32>
    %21 = vector.broadcast %11 : vector<1x4x128xf32> to vector<2x4x128xf32>
    %22 = arith.mulf %20, %21 : vector<2x4x128xf32>
    %23 = vector.broadcast %7 : vector<2x1x128xf32> to vector<2x4x128xf32>
    %24 = vector.broadcast %9 : vector<1x4x128xf32> to vector<2x4x128xf32>
    %25 = arith.mulf %23, %24 : vector<2x4x128xf32>
    %26 = arith.addf %22, %25 : vector<2x4x128xf32>
    %27 = arith.addf %2, %26 : vector<2x4x128xf32>
    %c2 = arith.constant 2 : index
    %c0_9 = arith.constant 0 : index
    %28 = vector.load %arg1[%c2, %c0_9] : memref<8x256xf32, #tpu.memory_space<vmem>>, vector<2x128xf32>
    %29 = vector.shape_cast %28 : vector<2x128xf32> to vector<2x1x128xf32>
    %c2_10 = arith.constant 2 : index
    %c128_11 = arith.constant 128 : index
    %30 = vector.load %arg1[%c2_10, %c128_11] : memref<8x256xf32, #tpu.memory_space<vmem>>, vector<2x128xf32>
    %31 = vector.shape_cast %30 : vector<2x128xf32> to vector<2x1x128xf32>
    %c4 = arith.constant 4 : index
    %c0_12 = arith.constant 0 : index
    %32 = vector.load %arg2[%c4, %c0_12] : memref<16x256xf32, #tpu.memory_space<vmem>>, vector<4x128xf32>
    %33 = vector.shape_cast %32 : vector<4x128xf32> to vector<1x4x128xf32>
    %c4_13 = arith.constant 4 : index
    %c128_14 = arith.constant 128 : index
    %34 = vector.load %arg2[%c4_13, %c128_14] : memref<16x256xf32, #tpu.memory_space<vmem>>, vector<4x128xf32>
    %35 = vector.shape_cast %34 : vector<4x128xf32> to vector<1x4x128xf32>
    %36 = vector.broadcast %29 : vector<2x1x128xf32> to vector<2x4x128xf32>
    %37 = vector.broadcast %33 : vector<1x4x128xf32> to vector<2x4x128xf32>
    %38 = arith.mulf %36, %37 : vector<2x4x128xf32>
    %39 = vector.broadcast %31 : vector<2x1x128xf32> to vector<2x4x128xf32>
    %40 = vector.broadcast %35 : vector<1x4x128xf32> to vector<2x4x128xf32>
    %41 = arith.mulf %39, %40 : vector<2x4x128xf32>
    %42 = arith.subf %38, %41 : vector<2x4x128xf32>
    %43 = arith.addf %1, %42 : vector<2x4x128xf32>
    %44 = vector.broadcast %29 : vector<2x1x128xf32> to vector<2x4x128xf32>
    %45 = vector.broadcast %35 : vector<1x4x128xf32> to vector<2x4x128xf32>
    %46 = arith.mulf %44, %45 : vector<2x4x128xf32>
    %47 = vector.broadcast %31 : vector<2x1x128xf32> to vector<2x4x128xf32>
    %48 = vector.broadcast %33 : vector<1x4x128xf32> to vector<2x4x128xf32>
    %49 = arith.mulf %47, %48 : vector<2x4x128xf32>
    %50 = arith.addf %46, %49 : vector<2x4x128xf32>
    %51 = arith.addf %3, %50 : vector<2x4x128xf32>
    %c4_15 = arith.constant 4 : index
    %c0_16 = arith.constant 0 : index
    %52 = vector.load %arg1[%c4_15, %c0_16] : memref<8x256xf32, #tpu.memory_space<vmem>>, vector<2x128xf32>
    %53 = vector.shape_cast %52 : vector<2x128xf32> to vector<2x1x128xf32>
    %c4_17 = arith.constant 4 : index
    %c128_18 = arith.constant 128 : index
    %54 = vector.load %arg1[%c4_17, %c128_18] : memref<8x256xf32, #tpu.memory_space<vmem>>, vector<2x128xf32>
    %55 = vector.shape_cast %54 : vector<2x128xf32> to vector<2x1x128xf32>
    %c8 = arith.constant 8 : index
    %c0_19 = arith.constant 0 : index
    %56 = vector.load %arg2[%c8, %c0_19] : memref<16x256xf32, #tpu.memory_space<vmem>>, vector<4x128xf32>
    %57 = vector.shape_cast %56 : vector<4x128xf32> to vector<1x4x128xf32>
    %c8_20 = arith.constant 8 : index
    %c128_21 = arith.constant 128 : index
    %58 = vector.load %arg2[%c8_20, %c128_21] : memref<16x256xf32, #tpu.memory_space<vmem>>, vector<4x128xf32>
    %59 = vector.shape_cast %58 : vector<4x128xf32> to vector<1x4x128xf32>
    %60 = vector.broadcast %53 : vector<2x1x128xf32> to vector<2x4x128xf32>
    %61 = vector.broadcast %57 : vector<1x4x128xf32> to vector<2x4x128xf32>
    %62 = arith.mulf %60, %61 : vector<2x4x128xf32>
    %63 = vector.broadcast %55 : vector<2x1x128xf32> to vector<2x4x128xf32>
    %64 = vector.broadcast %59 : vector<1x4x128xf32> to vector<2x4x128xf32>
    %65 = arith.mulf %63, %64 : vector<2x4x128xf32>
    %66 = arith.subf %62, %65 : vector<2x4x128xf32>
    %67 = arith.addf %19, %66 : vector<2x4x128xf32>
    %68 = vector.broadcast %53 : vector<2x1x128xf32> to vector<2x4x128xf32>
    %69 = vector.broadcast %59 : vector<1x4x128xf32> to vector<2x4x128xf32>
    %70 = arith.mulf %68, %69 : vector<2x4x128xf32>
    %71 = vector.broadcast %55 : vector<2x1x128xf32> to vector<2x4x128xf32>
    %72 = vector.broadcast %57 : vector<1x4x128xf32> to vector<2x4x128xf32>
    %73 = arith.mulf %71, %72 : vector<2x4x128xf32>
    %74 = arith.addf %70, %73 : vector<2x4x128xf32>
    %75 = arith.addf %27, %74 : vector<2x4x128xf32>
    %c6 = arith.constant 6 : index
    %c0_22 = arith.constant 0 : index
    %76 = vector.load %arg1[%c6, %c0_22] : memref<8x256xf32, #tpu.memory_space<vmem>>, vector<2x128xf32>
    %77 = vector.shape_cast %76 : vector<2x128xf32> to vector<2x1x128xf32>
    %c6_23 = arith.constant 6 : index
    %c128_24 = arith.constant 128 : index
    %78 = vector.load %arg1[%c6_23, %c128_24] : memref<8x256xf32, #tpu.memory_space<vmem>>, vector<2x128xf32>
    %79 = vector.shape_cast %78 : vector<2x128xf32> to vector<2x1x128xf32>
    %c12 = arith.constant 12 : index
    %c0_25 = arith.constant 0 : index
    %80 = vector.load %arg2[%c12, %c0_25] : memref<16x256xf32, #tpu.memory_space<vmem>>, vector<4x128xf32>
    %81 = vector.shape_cast %80 : vector<4x128xf32> to vector<1x4x128xf32>
    %c12_26 = arith.constant 12 : index
    %c128_27 = arith.constant 128 : index
    %82 = vector.load %arg2[%c12_26, %c128_27] : memref<16x256xf32, #tpu.memory_space<vmem>>, vector<4x128xf32>
    %83 = vector.shape_cast %82 : vector<4x128xf32> to vector<1x4x128xf32>
    %84 = vector.broadcast %77 : vector<2x1x128xf32> to vector<2x4x128xf32>
    %85 = vector.broadcast %81 : vector<1x4x128xf32> to vector<2x4x128xf32>
    %86 = arith.mulf %84, %85 : vector<2x4x128xf32>
    %87 = vector.broadcast %79 : vector<2x1x128xf32> to vector<2x4x128xf32>
    %88 = vector.broadcast %83 : vector<1x4x128xf32> to vector<2x4x128xf32>
    %89 = arith.mulf %87, %88 : vector<2x4x128xf32>
    %90 = arith.subf %86, %89 : vector<2x4x128xf32>
    %91 = arith.addf %43, %90 : vector<2x4x128xf32>
    %92 = vector.broadcast %77 : vector<2x1x128xf32> to vector<2x4x128xf32>
    %93 = vector.broadcast %83 : vector<1x4x128xf32> to vector<2x4x128xf32>
    %94 = arith.mulf %92, %93 : vector<2x4x128xf32>
    %95 = vector.broadcast %79 : vector<2x1x128xf32> to vector<2x4x128xf32>
    %96 = vector.broadcast %81 : vector<1x4x128xf32> to vector<2x4x128xf32>
    %97 = arith.mulf %95, %96 : vector<2x4x128xf32>
    %98 = arith.addf %94, %97 : vector<2x4x128xf32>
    %99 = arith.addf %51, %98 : vector<2x4x128xf32>
    %100 = arith.addf %67, %91 : vector<2x4x128xf32>
    %101 = arith.addf %75, %99 : vector<2x4x128xf32>
    %c0_28 = arith.constant 0 : index
    %c0_29 = arith.constant 0 : index
    %c0_30 = arith.constant 0 : index
    %102 = vector.load %arg3[%c0_28, %c0_29, %c0_30] : memref<2x4x256xf32, #tpu.memory_space<vmem>>, vector<2x4x128xf32>
    tpu.vector_store %arg3[%c0_28, %c0_29, %c0_30], %100 {strides = array<i32>} : memref<2x4x256xf32, #tpu.memory_space<vmem>>, vector<2x4x128xf32>,
    %c0_31 = arith.constant 0 : index
    %c0_32 = arith.constant 0 : index
    %c128_33 = arith.constant 128 : index
    %103 = vector.load %arg3[%c0_31, %c0_32, %c128_33] : memref<2x4x256xf32, #tpu.memory_space<vmem>>, vector<2x4x128xf32>
    tpu.vector_store %arg3[%c0_31, %c0_32, %c128_33], %101 {strides = array<i32>} : memref<2x4x256xf32, #tpu.memory_space<vmem>>, vector<2x4x128xf32>,
    return
  }
  func.func @transform_0(%arg0: i32) -> (i32, i32) {
    %c0_i32 = arith.constant 0 : i32
    %c0_i32_0 = arith.constant 0 : i32
    return %c0_i32, %arg0 : i32, i32
  }
  func.func @transform_1(%arg0: i32) -> (i32, i32) {
    %c0_i32 = arith.constant 0 : i32
    %c0_i32_0 = arith.constant 0 : i32
    return %c0_i32, %arg0 : i32, i32
  }
  func.func @transform_2(%arg0: i32) -> (i32, i32, i32) {
    %c0_i32 = arith.constant 0 : i32
    %c0_i32_0 = arith.constant 0 : i32
    %c0_i32_1 = arith.constant 0 : i32
    return %c0_i32, %c0_i32_0, %arg0 : i32, i32, i32
  }
}

</mosaic_0001>

<bundles_post_ra>
// kernel: reverse.0
= control target key start
LH: loop header
LB: loop body
LE: loop exit
PB: predicated region body
PF: predicated region fallthrough
CT: control target
= control target key end

     0   :  { %v72_v3 = vlaneseq  ;;  %v65_v6 = vld [vmem:[#allocation0 + $0x7] ss:$-1 sm:$0xff]  ;;  %v79_v8 = vld [vmem:[#allocation0 + $0x17] ss:$-1 sm:$0xff]  ;;  %s331_s0 = inlined_call_operand.vmem [shape: f32[2,4,16,7], index: 0, kind: input, shape index: {}]   ;;  %s332_s1 = inlined_call_operand.vmem [shape: f32[2,4,16,7], index: 1, kind: output, shape index: {}]  }
   0x1   :  { %v45_v0 = vld [vmem:[%s331_s0] sm:$0xff]  ;;  %v47_v1 = vld [vmem:[%s331_s0 + $0x8] sm:$0xff]  ;;  %v49_v2 = vld [vmem:[%s331_s0 + $0x10] sm:$0xff]  ;;  %v66_v12 = vrot.slane %v65_v6, 1  ;;  %v80_v13 = vrot.slane %v79_v8, 1 }
   0x2   :  { %46 = vst [vmem:[#allocation0 + $0x8] sm:$0xff] %v45_v0  ;;  %v51_v4 = vld [vmem:[%s331_s0 + $0x18] sm:$0xff]  ;;  %v53_v5 = vld [vmem:[%s331_s0 + $0x20] sm:$0xff]  ;;  %v55_v7 = vld [vmem:[%s331_s0 + $0x28] sm:$0xff]  ;;  %v73_v10 = vshrl.u32 %v72_v3, 7 }
   0x3   :  { %48 = vst [vmem:[#allocation0 + $0x18] sm:$0xff] %v47_v1  ;;  %v57_v9 = vld [vmem:[%s331_s0 + $0x30] sm:$0xff]  ;;  %v59_v11 = vld [vmem:[%s331_s0 + $0x38] sm:$0xff]  ;;  %v93_v14 = vld [vmem:[#allocation0 + $0x27] ss:$-1 sm:$0xff] }
   0x4   :  { %50 = vst [vmem:[#allocation0 + $0x28] sm:$0xff] %v49_v2  ;;  %vm74_vm0 = vcmp.lt.s32.totalorder %v73_v10, 7  ;;  %v107_v16 = vld [vmem:[#allocation0 + $0x37] ss:$-1 sm:$0xff]  ;;  %v94_v19 = vrot.slane %v93_v14, 1 }
   0x5   :  { %52 = vst [vmem:[#allocation0 + $0x38] sm:$0xff] %v51_v4  ;;  %v121_v22 = vld [vmem:[#allocation0 + $0x47] ss:$-1 sm:$0xff]  ;;  %v108_v24 = vrot.slane %v107_v16, 1  ;;  %v135_v28 = vld [vmem:[#allocation0 + $0x57] ss:$-1 sm:$0xff] }
   0x6   :  { %54 = vst [vmem:[#allocation0 + $0x48] sm:$0xff] %v53_v5  ;;  %v122_v29 = vrot.slane %v121_v22, 1  ;;  %v149_v32 = vld [vmem:[#allocation0 + $0x67] ss:$-1 sm:$0xff]  ;;  %v136_v33 = vrot.slane %v135_v28, 1 }
   0x7   :  { %56 = vst [vmem:[#allocation0 + $0x58] sm:$0xff] %v55_v7  ;;  %v163_v36 = vld [vmem:[#allocation0 + $0x77] ss:$-1 sm:$0xff]  ;;  %v150_v37 = vrot.slane %v149_v32, 1 }
   0x8   :  { %58 = vst [vmem:[#allocation0 + $0x68] sm:$0xff] %v57_v9  ;;  %v164_v40 = vrot.slane %v163_v36, 1 }
   0x9   :  { %60 = vst [vmem:[#allocation0 + $0x78] sm:$0xff] %v59_v11  ;;  %v70_v15 = vld [vmem:[#allocation0 + $0xf] ss:$-1 sm:$0xff] }
   0xa   :  { %67 = vst [vmem:[#allocation1] sm:$0xff] %v66_v12  ;;  %v71_v17 = vrot.slane %v70_v15, 1  ;;  %v84_v18 = vld [vmem:[#allocation0 + $0x1f] ss:$-1 sm:$0xff] }
   0xb   :  { %81 = vst [vmem:[#allocation1 + $0x8] sm:$0xff] %v80_v13  ;;  %v85_v20 = vrot.slane %v84_v18, 1  ;;  %v98_v21 = vld [vmem:[#allocation0 + $0x2f] ss:$-1 sm:$0xff] }
   0xc   :  { %75 = vst.msk [vmem:[#allocation1] sm:$0xff] %vm74_vm0, %v71_v17  ;;  %v99_v23 = vrot.slane %v98_v21, 1  ;;  %v112_v25 = vld [vmem:[#allocation0 + $0x3f] ss:$-1 sm:$0xff] }
   0xd   :  { %89 = vst.msk [vmem:[#allocation1 + $0x8] sm:$0xff] %vm74_vm0, %v85_v20  ;;  %v113_v26 = vrot.slane %v112_v25, 1  ;;  %v126_v27 = vld [vmem:[#allocation0 + $0x4f] ss:$-1 sm:$0xff] }
   0xe   :  { %95 = vst [vmem:[#allocation1 + $0x10] sm:$0xff] %v94_v19  ;;  %v140_v30 = vld [vmem:[#allocation0 + $0x5f] ss:$-1 sm:$0xff]  ;;  %v127_v31 = vrot.slane %v126_v27, 1 }
   0xf   :  { %103 = vst.msk [vmem:[#allocation1 + $0x10] sm:$0xff] %vm74_vm0, %v99_v23  ;;  %v154_v34 = vld [vmem:[#allocation0 + $0x6f] ss:$-1 sm:$0xff]  ;;  %v141_v35 = vrot.slane %v140_v30, 1 }
  0x10   :  { %109 = vst [vmem:[#allocation1 + $0x18] sm:$0xff] %v108_v24  ;;  %v168_v38 = vld [vmem:[#allocation0 + $0x7f] ss:$-1 sm:$0xff]  ;;  %v155_v39 = vrot.slane %v154_v34, 1 }
  0x11   :  { %117 = vst.msk [vmem:[#allocation1 + $0x18] sm:$0xff] %vm74_vm0, %v113_v26  ;;  %v169_v41 = vrot.slane %v168_v38, 1 }
  0x12   :  { %123 = vst [vmem:[#allocation1 + $0x20] sm:$0xff] %v122_v29 }
  0x13   :  { %131 = vst.msk [vmem:[#allocation1 + $0x20] sm:$0xff] %vm74_vm0, %v127_v31  ;;  %v216_v42 = vld [vmem:[#allocation1] sm:$0xff] }
  0x14   :  { %137 = vst [vmem:[#allocation1 + $0x28] sm:$0xff] %v136_v33  ;;  %v218_v43 = vld [vmem:[#allocation1 + $0x8] sm:$0xff] }
  0x15   :  { %145 = vst.msk [vmem:[#allocation1 + $0x28] sm:$0xff] %vm74_vm0, %v141_v35 }
  0x16   :  { %151 = vst [vmem:[#allocation1 + $0x30] sm:$0xff] %v150_v37  ;;  %v220_v44 = vld [vmem:[#allocation1 + $0x10] sm:$0xff] }
  0x17   :  { %159 = vst.msk [vmem:[#allocation1 + $0x30] sm:$0xff] %vm74_vm0, %v155_v39 }
  0x18   :  { %165 = vst [vmem:[#allocation1 + $0x38] sm:$0xff] %v164_v40  ;;  %v222_v45 = vld [vmem:[#allocation1 + $0x18] sm:$0xff] }
  0x19   :  { %173 = vst.msk [vmem:[#allocation1 + $0x38] sm:$0xff] %vm74_vm0, %v169_v41 }
  0x1a   :  { %217 = vst [vmem:[%s332_s1] sm:$0xff] %v216_v42  ;;  %v224_v46 = vld [vmem:[#allocation1 + $0x20] sm:$0xff] }
  0x1b   :  { %219 = vst [vmem:[%s332_s1 + $0x8] sm:$0xff] %v218_v43 }
  0x1c   :  { %221 = vst [vmem:[%s332_s1 + $0x10] sm:$0xff] %v220_v44  ;;  %v226_v47 = vld [vmem:[#allocation1 + $0x28] sm:$0xff] }
  0x1d   :  { %223 = vst [vmem:[%s332_s1 + $0x18] sm:$0xff] %v222_v45 }
  0x1e   :  { %225 = vst [vmem:[%s332_s1 + $0x20] sm:$0xff] %v224_v46  ;;  %v228_v48 = vld [vmem:[#allocation1 + $0x30] sm:$0xff] }
  0x1f   :  { %227 = vst [vmem:[%s332_s1 + $0x28] sm:$0xff] %v226_v47 }
  0x20   :  { %229 = vst [vmem:[%s332_s1 + $0x30] sm:$0xff] %v228_v48  ;;  %v230_v49 = vld [vmem:[#allocation1 + $0x38] sm:$0xff] }
  0x21   :  { %231 = vst [vmem:[%s332_s1 + $0x38] sm:$0xff] %v230_v49 }

// kernel: _lambda_.1
= control target key start
LH: loop header
LB: loop body
LE: loop exit
PB: predicated region body
PF: predicated region fallthrough
CT: control target
= control target key end

     0   :  { %s283_s0 = inlined_call_operand.vmem [shape: f32[8,256], index: 0, kind: input, shape index: {}]   ;;  %s284_s1 = inlined_call_operand.vmem [shape: f32[16,256], index: 1, kind: input, shape index: {}]   ;;  %s285_s2 = inlined_call_operand.vmem [shape: f32[2,4,256], index: 2, kind: output, shape index: {}]  }
   0x1   :  { %v43_v0 = vld [vmem:[%s283_s0] sm:$0xc]  ;;  %v50_v1 = vld [vmem:[%s283_s0 + $0x8] sm:$0xc]  ;;  %v83_v4 = vld [vmem:[%s283_s0] sm:$0x30] }
   0x2   :  { %45 = vst [vmem:[#allocation1] sm:$0xff] %v43_v0  ;;  %v90_v7 = vld [vmem:[%s283_s0 + $0x8] sm:$0x30]  ;;  %v123_v10 = vld [vmem:[%s283_s0] sm:$0xc0] }
   0x3   :  { %v11_v11 = vld [vmem:[%s283_s0] sm:$0x3]  ;;  %v14_v12 = vld [vmem:[%s283_s0 + $0x8] sm:$0x3]  ;;  %v130_v25 = vld [vmem:[%s283_s0 + $0x8] sm:$0xc0] }
   0x4   :  { %v19_v15 = vperm.slane %v11_v11, 0  ;;  %v25_v16 = vperm.slane %v14_v12, 0  ;;  %v17_v17 = vld [vmem:[%s284_s1] sm:$0xf]  ;;  %v18_v18 = vld [vmem:[%s284_s1 + $0x8] sm:$0xf] }
   0x5   :  { %v13_v19 = vrot.slane %v11_v11, 1  ;;  %v16_v20 = vrot.slane %v14_v12, 1  ;;  %v57_v34 = vld [vmem:[%s284_s1] sm:$0xf0]  ;;  %v58_v35 = vld [vmem:[%s284_s1 + $0x8] sm:$0xf0] }
   0x6   :  { %v235_v21 = vmul.f32 %v19_v15, %v17_v17  ;;  %v237_v22 = vmul.f32 %v25_v16, %v18_v18  ;;  %v35_v23 = vmul.f32 %v19_v15, %v18_v18  ;;  %v37_v24 = vmul.f32 %v25_v16, %v17_v17  ;;  %v97_v47 = vld [vmem:[%s284_s1 + $0x10] sm:$0xf]  ;;  %v98_v56 = vld [vmem:[%s284_s1 + $0x18] sm:$0xf]  ;;  %v137_v61 = vld [vmem:[%s284_s1 + $0x10] sm:$0xf0] }
   0x7   :  { %v20_v27 = vperm.slane %v13_v19, 0  ;;  %v26_v28 = vperm.slane %v16_v20, 0  ;;  %v138_v62 = vld [vmem:[%s284_s1 + $0x18] sm:$0xf0] }
   0x8   :  { %v31_v33 = vsub.f32 %v235_v21, %v237_v22  ;;  %v250_v37 = vadd.f32 %v37_v24, %v35_v23 }
   0x9   :  { %v47_v2 = vld [vmem:[#allocation1 + $0x2] ss:$9 sm:$0xff]  ;;  %v24_v39 = vmul.f32 %v20_v27, %v17_v17  ;;  %v30_v40 = vmul.f32 %v26_v28, %v18_v18  ;;  %v36_v41 = vmul.f32 %v20_v27, %v18_v18  ;;  %v38_v53 = vmul.f32 %v26_v28, %v17_v17 }
   0xa   :  { %v49_v3 = vld [vmem:[#allocation1 + $0x3] ss:$9 sm:$0xff]  ;;  %v59_v32 = vperm.slane %v47_v2, 0 }
   0xb   :  { %52 = vst [vmem:[#allocation1] sm:$0xff] %v50_v1  ;;  %v60_v36 = vperm.slane %v49_v3, 0  ;;  %v32_v58 = vsub.f32 %v24_v39, %v30_v40 }
   0xc   :  { %v63_v46 = vmul.f32 %v59_v32, %v57_v34  ;;  %v75_v52 = vmul.f32 %v59_v32, %v58_v35 }
   0xd   :  { %v64_v51 = vmul.f32 %v60_v36, %v57_v34  ;;  %v76_v54 = vmul.f32 %v60_v36, %v58_v35 }
  0x12   :  { %v54_v5 = vld [vmem:[#allocation1 + $0x2] ss:$9 sm:$0xff] }
  0x13   :  { %v56_v6 = vld [vmem:[#allocation1 + $0x3] ss:$9 sm:$0xff]  ;;  %v65_v26 = vperm.slane %v54_v5, 0 }
  0x14   :  { %85 = vst [vmem:[#allocation1] sm:$0xff] %v83_v4  ;;  %v66_v29 = vperm.slane %v56_v6, 0 }
  0x15   :  { %v69_v38 = vmul.f32 %v65_v26, %v58_v35  ;;  %v77_v44 = vmul.f32 %v65_v26, %v57_v34 }
  0x16   :  { %v70_v43 = vmul.f32 %v66_v29, %v58_v35  ;;  %v78_v45 = vmul.f32 %v66_v29, %v57_v34 }
  0x17   :  { %v71_v55 = vsub.f32 %v63_v46, %v69_v38  ;;  %v79_v0 = vadd.f32 %v77_v44, %v75_v52 }
  0x18   :  { %v72_v63 = vsub.f32 %v64_v51, %v70_v43  ;;  %v80_v1 = vadd.f32 %v78_v45, %v76_v54 }
  0x1b   :  { %v214_v8 = vld [vmem:[#allocation1 + $0x4] ss:$9 sm:$0xff] }
  0x1c   :  { %v216_v9 = vld [vmem:[#allocation1 + $0x5] ss:$9 sm:$0xff]  ;;  %v99_v42 = vperm.slane %v214_v8, 0 }
  0x1d   :  { %92 = vst [vmem:[#allocation1] sm:$0xff] %v90_v7  ;;  %v100_v49 = vperm.slane %v216_v9, 0 }
  0x1e   :  { %v103_v60 = vmul.f32 %v99_v42, %v97_v47 }
  0x1f   :  { %v104_v4 = vmul.f32 %v100_v49, %v97_v47 }
  0x24   :  { %v94_v13 = vld [vmem:[#allocation1 + $0x4] ss:$9 sm:$0xff] }
  0x25   :  { %v227_v14 = vld [vmem:[#allocation1 + $0x5] ss:$9 sm:$0xff]  ;;  %v105_v48 = vperm.slane %v94_v13, 0 }
  0x26   :  { %125 = vst [vmem:[#allocation1] sm:$0xff] %v123_v10  ;;  %v106_v50 = vperm.slane %v227_v14, 0  ;;  %v115_v10 = vmul.f32 %v99_v42, %v98_v56 }
  0x27   :  { %v109_v2 = vmul.f32 %v105_v48, %v98_v56  ;;  %v117_v7 = vmul.f32 %v105_v48, %v97_v47 }
  0x28   :  { %v110_v5 = vmul.f32 %v106_v50, %v98_v56  ;;  %v118_v11 = vmul.f32 %v106_v50, %v97_v47 }
  0x29   :  { %v111_v20 = vsub.f32 %v103_v60, %v109_v2  ;;  %v119_v24 = vadd.f32 %v117_v7, %v115_v10 }
  0x2a   :  { %v112_v23 = vsub.f32 %v104_v4, %v110_v5 }
  0x2b   :  { %v113_v38 = vadd.f32 %v111_v20, %v31_v33  ;;  %v121_v40 = vadd.f32 %v119_v24, %v250_v37 }
  0x2c   :  { %v114_v39 = vadd.f32 %v112_v23, %v32_v58 }
  0x2d   :  { %v127_v30 = vld [vmem:[#allocation1 + $0x6] ss:$9 sm:$0xff] }
  0x2e   :  { %v129_v31 = vld [vmem:[#allocation1 + $0x7] ss:$9 sm:$0xff]  ;;  %v139_v57 = vperm.slane %v127_v30, 0  ;;  %v40_v30 = vadd.f32 %v38_v53, %v36_v41 }
  0x2f   :  { %132 = vst [vmem:[#allocation1] sm:$0xff] %v130_v25  ;;  %v140_v59 = vperm.slane %v129_v31, 0  ;;  %v116_v25 = vmul.f32 %v100_v49, %v98_v56 }
  0x30   :  { %v143_v12 = vmul.f32 %v139_v57, %v137_v61  ;;  %v155_v14 = vmul.f32 %v139_v57, %v138_v62 }
  0x31   :  { %v144_v13 = vmul.f32 %v140_v59, %v137_v61  ;;  %v156_v15 = vmul.f32 %v140_v59, %v138_v62  ;;  %v120_v31 = vadd.f32 %v118_v11, %v116_v25 }
  0x33   :  { %v122_v46 = vadd.f32 %v120_v31, %v40_v30 }
  0x36   :  { %v134_v3 = vld [vmem:[#allocation1 + $0x6] ss:$9 sm:$0xff] }
  0x37   :  { %v136_v6 = vld [vmem:[#allocation1 + $0x7] ss:$9 sm:$0xff]  ;;  %v145_v8 = vperm.slane %v134_v3, 0 }
  0x38   :  { %v146_v9 = vperm.slane %v136_v6, 0 }
  0x39   :  { %v149_v16 = vmul.f32 %v145_v8, %v138_v62  ;;  %v157_v18 = vmul.f32 %v145_v8, %v137_v61 }
  0x3a   :  { %v150_v17 = vmul.f32 %v146_v9, %v138_v62  ;;  %v158_v19 = vmul.f32 %v146_v9, %v137_v61 }
  0x3b   :  { %v151_v26 = vsub.f32 %v143_v12, %v149_v16  ;;  %v159_v28 = vadd.f32 %v157_v18, %v155_v14 }
  0x3c   :  { %v152_v27 = vsub.f32 %v144_v13, %v150_v17  ;;  %v160_v29 = vadd.f32 %v158_v19, %v156_v15 }
  0x3d   :  { %v153_v32 = vadd.f32 %v151_v26, %v71_v55  ;;  %v161_v35 = vadd.f32 %v159_v28, %v79_v0 }
  0x3e   :  { %v154_v34 = vadd.f32 %v152_v27, %v72_v63  ;;  %v162_v36 = vadd.f32 %v160_v29, %v80_v1 }
  0x3f   :  { %v165_v42 = vrot.slane %v153_v32, 4  ;;  %v173_v44 = vrot.slane %v161_v35, 4 }
  0x40   :  { %v166_v43 = vrot.slane %v154_v34, 4  ;;  %v174_v45 = vrot.slane %v162_v36, 4 }
  0x41   :  { %v169_v47 = vadd.f32 %v165_v42, %v113_v38  ;;  %v177_v41 = vadd.f32 %v173_v44, %v121_v40 }
  0x42   :  { %v170_v48 = vadd.f32 %v166_v43, %v114_v39  ;;  %v178_v49 = vadd.f32 %v174_v45, %v122_v46 }
  0x43   :  { %179 = vst [vmem:[%s285_s2] sm:$0xf] %v169_v47 }
  0x44   :  { %180 = vst [vmem:[%s285_s2 + $0x8] sm:$0xf] %v170_v48 }
  0x45   :  { %181 = vst [vmem:[%s285_s2 + $0x4] sm:$0xf] %v177_v41 }
  0x46   :  { %182 = vst [vmem:[%s285_s2 + $0xc] sm:$0xf] %v178_v49 }

</bundles_post_ra>
